<compile_context>
chip_gen: v6e
topology: v6e:2x2x1
jax: 0.10.0
libtpu: 0.0.40
codegen_flags: <defaults>
</compile_context>

<pallas_src>
import jax
import jax.numpy as jnp
from jax.experimental import pallas as pl
from jax.experimental.pallas import tpu as pltpu


def _objects_out_kernel(x_ref, w1_ref, b1_ref, w2_ref, b2_ref, w3_ref, b3_ref,
                        alpha_ref, o_ref):
    """Fused: Linear+PReLU, [Dropout=id], Linear+PReLU, [Dropout=id], Linear.

    x_ref : (tm, in_dim)             VMEM (native dtype -> MXU operand)
    w*_ref: (in, out)                VMEM, grid-invariant
    b*_ref: (1, out) f32             VMEM, grid-invariant (broadcast over rows)
    alpha_ref: (2,) f32              SMEM (scalar PReLU slopes, torch default
                                     num_parameters=1 per PReLU module)
    o_ref : (tm, out)                VMEM
    """
    a1 = alpha_ref[0]
    a2 = alpha_ref[1]

    # Layer 1: Linear(in_dim -> H) + PReLU. MXU in operand dtype, f32 accumulate.
    h1 = jnp.dot(x_ref[...], w1_ref[...], preferred_element_type=jnp.float32)
    h1 = h1 + b1_ref[...].astype(jnp.float32)
    h1 = jnp.where(h1 >= 0, h1, a1 * h1)          # f32 VPU math (v5e-safe)

    # Layer 2: Linear(H -> H) + PReLU.
    h2 = jnp.dot(h1.astype(w2_ref.dtype), w2_ref[...],
                 preferred_element_type=jnp.float32)
    h2 = h2 + b2_ref[...].astype(jnp.float32)
    h2 = jnp.where(h2 >= 0, h2, a2 * h2)

    # Layer 3: Linear(H -> objects * object_shape), no activation.
    y = jnp.dot(h2.astype(w3_ref.dtype), w3_ref[...],
                preferred_element_type=jnp.float32)
    y = y + b3_ref[...].astype(jnp.float32)

    o_ref[...] = y.astype(o_ref.dtype)


def _pick_tm(M):
    """Row tile selection.

    Small/medium batches: one grid step (the kernel is dispatch/DMA-overhead
    bound, extra steps only add ~0.35us each). Large batches: cdiv tiling with
    tm <= 2048 and at least 2 grid steps so the 'parallel' grid axis can shard
    across v7x's two TensorCores. Weights are grid-invariant and tiny, so the
    only per-step cost is the activation/output DMA.
    """
    if M <= 512:
        return M
    tm = min(2048, ((pl.cdiv(M, 2) + 7) // 8) * 8)   # multiple of 8, >= 2 steps
    return tm


def objects_out_forward(h_w_action, params, *, n_objects, object_shape, tm=None):
    """JAX wrapper reproducing Objects_OUT.forward (eval mode)."""
    # Shape promotion identical to the torch module: 2-D -> unsqueeze(1).
    if h_w_action.ndim == 2:
        h_w_action = h_w_action[:, None, :]
    E, S, D = h_w_action.shape

    w1t, b1 = params["w1t"], params["b1"]
    w2t, b2 = params["w2t"], params["b2"]
    w3t, b3 = params["w3t"], params["b3"]
    alphas = params["alphas"]
    H = w1t.shape[1]
    N = w3t.shape[1]                       # objects * object_shape
    assert N == n_objects * object_shape

    M = E * S
    if tm is None:
        tm = _pick_tm(M)
    tm = min(tm, M)
    grid_m = pl.cdiv(M, tm)
    x = h_w_action.reshape(M, D)           # free row-major view

    flops = 2 * M * (D * H + H * H + H * N)
    bytes_accessed = (x.nbytes + w1t.nbytes + b1.nbytes + w2t.nbytes + b2.nbytes
                      + w3t.nbytes + b3.nbytes + M * N * x.dtype.itemsize)

    out = pl.pallas_call(
        _objects_out_kernel,
        out_shape=jax.ShapeDtypeStruct((M, N), h_w_action.dtype),
        grid=(grid_m,),
        in_specs=[
            # activations: tm rows per grid step
            pl.BlockSpec((tm, D), lambda i: (i, 0)),
            # weights / biases: full, grid-invariant (resident across steps)
            pl.BlockSpec((D, H), lambda i: (0, 0)),
            pl.BlockSpec((1, H), lambda i: (0, 0)),
            pl.BlockSpec((H, H), lambda i: (0, 0)),
            pl.BlockSpec((1, H), lambda i: (0, 0)),
            pl.BlockSpec((H, N), lambda i: (0, 0)),
            pl.BlockSpec((1, N), lambda i: (0, 0)),
            # PReLU alphas: scalars in SMEM
            pl.BlockSpec(memory_space=pltpu.MemorySpace.SMEM),
        ],
        out_specs=pl.BlockSpec((tm, N), lambda i: (i, 0)),
        compiler_params=pltpu.CompilerParams(
            dimension_semantics=("parallel",)),
        cost_estimate=pl.CostEstimate(
            flops=flops, transcendentals=0, bytes_accessed=bytes_accessed),
    )(x, w1t, b1, w2t, b2, w3t, b3, alphas)

    # Objects_OUT's final reshape is a free row-major view of the output.
    return out.reshape(E, S, n_objects, object_shape)


def init_params(key, in_dim, hidden, out_dim, dtype=jnp.float32):
    """Deterministic synthetic parameters, stored exactly as the kernel consumes
    them (transposed (in, out) weights; f32 biases/alphas). No per-call prep."""
    k1, k2, k3 = jax.random.split(key, 3)

    def lin(k, fan_in, fan_out):
        bound = 1.0 / jnp.sqrt(fan_in)
        kw, kb = jax.random.split(k)
        w = jax.random.uniform(kw, (fan_in, fan_out), jnp.float32, -bound, bound)
        b = jax.random.uniform(kb, (1, fan_out), jnp.float32, -bound, bound)
        return w.astype(dtype), b                        # biases stay f32

    w1t, b1 = lin(k1, in_dim, hidden)
    w2t, b2 = lin(k2, hidden, hidden)
    w3t, b3 = lin(k3, hidden, out_dim)
    # PReLU default init: alpha = 0.25 (one scalar per PReLU module; 2 modules)
    alphas = jnp.full((2,), 0.25, dtype=jnp.float32)
    return dict(w1t=w1t, b1=b1, w2t=w2t, b2=b2, w3t=w3t, b3=b3, alphas=alphas)


def _reference(h_w_action, p, n_objects, object_shape):
    """Pure-JAX f32 reference of the same forward (eval mode)."""
    if h_w_action.ndim == 2:
        h_w_action = h_w_action[:, None, :]
    E, S, D = h_w_action.shape
    x = h_w_action.astype(jnp.float32)

    def prelu(v, a):
        return jnp.where(v >= 0, v, a * v)

    w1 = p["w1t"].astype(jnp.float32)
    w2 = p["w2t"].astype(jnp.float32)
    w3 = p["w3t"].astype(jnp.float32)
    h = prelu(x @ w1 + p["b1"][0], p["alphas"][0])
    h = prelu(h @ w2 + p["b2"][0], p["alphas"][1])
    y = h @ w3 + p["b3"][0]
    return y.reshape(E, S, n_objects, object_shape)


if __name__ == "__main__":
    # Small, module-consistent shapes:
    #   episodes=2, steps=8, objects=4, object_shape=16,
    #   hidden_size=32, pvrnn_mtrnn_size=32  ->  in_dim = 32 + 2*32 = 96
    E, S, O, F, H, PV = 2, 8, 4, 16, 32, 32
    D = PV + 2 * H

    key = jax.random.PRNGKey(0)
    k_in, k_par = jax.random.split(key)
    h_w_action = jax.random.normal(k_in, (E, S, D), dtype=jnp.float32)

    # --- f32 path ---
    params = init_params(k_par, D, H, O * F)
    out = objects_out_forward(h_w_action, params, n_objects=O, object_shape=F)
    out = jax.block_until_ready(out)
    ref = _reference(h_w_action, params, O, F)
    assert out.shape == (E, S, O, F), out.shape
    assert jnp.allclose(out, ref, atol=1e-4, rtol=1e-4), \
        float(jnp.max(jnp.abs(out - ref)))

    # --- bf16-operand path (MXU-native on v6e/v7x), loose tolerance ---
    params_bf16 = init_params(k_par, D, H, O * F, dtype=jnp.bfloat16)
    x_bf16 = h_w_action.astype(jnp.bfloat16)
    out_bf16 = objects_out_forward(x_bf16, params_bf16,
                                   n_objects=O, object_shape=F)
    out_bf16 = jax.block_until_ready(out_bf16)
    ref_bf16 = _reference(x_bf16, params_bf16, O, F)
    assert out_bf16.shape == (E, S, O, F), out_bf16.shape
    assert jnp.allclose(out_bf16.astype(jnp.float32), ref_bf16,
                        atol=5e-2, rtol=5e-2), \
        float(jnp.max(jnp.abs(out_bf16.astype(jnp.float32) - ref_bf16)))

    print("KERNEL_OK")
</pallas_src>

<mosaic_0001>
module attributes {stable_mosaic.version = 11 : i64} {
  func.func @_objects_out_kernel(%arg0: i32, %arg1: memref<16x96xf32, #tpu.memory_space<vmem>>, %arg2: memref<96x32xf32, #tpu.memory_space<vmem>>, %arg3: memref<1x32xf32, #tpu.memory_space<vmem>>, %arg4: memref<32x32xf32, #tpu.memory_space<vmem>>, %arg5: memref<1x32xf32, #tpu.memory_space<vmem>>, %arg6: memref<32x64xf32, #tpu.memory_space<vmem>>, %arg7: memref<1x64xf32, #tpu.memory_space<vmem>>, %arg8: memref<2xf32, #tpu.memory_space<smem>>, %arg9: memref<16x64xf32, #tpu.memory_space<vmem>>) attributes {dimension_semantics = [#tpu.dimension_semantics<parallel>], iteration_bounds = array<i64: 1>, scalar_prefetch = 0 : i64, scratch_operands = 0 : i64, tpu.core_type = #tpu.core_type<tc>, window_params = [{transform_indices = @transform_0, window_bounds = array<i64: 16, 96>}, {pipeline_mode = #tpu.pipeline_mode<synchronous>, transform_indices = @transform_1, window_bounds = array<i64: 96, 32>}, {pipeline_mode = #tpu.pipeline_mode<synchronous>, transform_indices = @transform_2, window_bounds = array<i64: 1, 32>}, {pipeline_mode = #tpu.pipeline_mode<synchronous>, transform_indices = @transform_3, window_bounds = array<i64: 32, 32>}, {pipeline_mode = #tpu.pipeline_mode<synchronous>, transform_indices = @transform_4, window_bounds = array<i64: 1, 32>}, {pipeline_mode = #tpu.pipeline_mode<synchronous>, transform_indices = @transform_5, window_bounds = array<i64: 32, 64>}, {pipeline_mode = #tpu.pipeline_mode<synchronous>, transform_indices = @transform_6, window_bounds = array<i64: 1, 64>}, {transform_indices = @transform_7, window_bounds = array<i64: 2>}, {transform_indices = @transform_8, window_bounds = array<i64: 16, 64>}]} {
    %c0 = arith.constant 0 : index
    %0 = memref.load %arg8[%c0] : memref<2xf32, #tpu.memory_space<smem>>
    %c1 = arith.constant 1 : index
    %1 = memref.load %arg8[%c1] : memref<2xf32, #tpu.memory_space<smem>>
    %c0_0 = arith.constant 0 : index
    %c0_1 = arith.constant 0 : index
    %2 = vector.load %arg1[%c0_0, %c0_1] : memref<16x96xf32, #tpu.memory_space<vmem>>, vector<16x96xf32>
    %c0_2 = arith.constant 0 : index
    %c0_3 = arith.constant 0 : index
    %3 = vector.load %arg2[%c0_2, %c0_3] : memref<96x32xf32, #tpu.memory_space<vmem>>, vector<96x32xf32>
    %cst = arith.constant dense<0.000000e+00> : vector<16x32xf32>
    %4 = tpu.matmul %2, %3, %cst {dimension_numbers = #tpu.dot_dimension_numbers<[1], [0], [0], [1], [0, 0, 1, 1], [], []>} : vector<16x96xf32>, vector<96x32xf32>, vector<16x32xf32> -> vector<16x32xf32>
    %c0_4 = arith.constant 0 : index
    %c0_5 = arith.constant 0 : index
    %5 = vector.load %arg3[%c0_4, %c0_5] : memref<1x32xf32, #tpu.memory_space<vmem>>, vector<1x32xf32>
    %6 = vector.broadcast %5 : vector<1x32xf32> to vector<16x32xf32>
    %7 = arith.addf %4, %6 : vector<16x32xf32>
    %cst_6 = arith.constant 0.000000e+00 : f32
    %8 = vector.broadcast %cst_6 : f32 to vector<16x32xf32>
    %9 = arith.cmpf oge, %7, %8 : vector<16x32xf32>
    %10 = vector.broadcast %0 : f32 to vector<16x32xf32>
    %11 = arith.mulf %10, %7 : vector<16x32xf32>
    %12 = arith.select %9, %7, %11 : vector<16x32xi1>, vector<16x32xf32>
    %c0_7 = arith.constant 0 : index
    %c0_8 = arith.constant 0 : index
    %13 = vector.load %arg4[%c0_7, %c0_8] : memref<32x32xf32, #tpu.memory_space<vmem>>, vector<32x32xf32>
    %cst_9 = arith.constant dense<0.000000e+00> : vector<16x32xf32>
    %14 = tpu.matmul %12, %13, %cst_9 {dimension_numbers = #tpu.dot_dimension_numbers<[1], [0], [0], [1], [0, 0, 1, 1], [], []>} : vector<16x32xf32>, vector<32x32xf32>, vector<16x32xf32> -> vector<16x32xf32>
    %c0_10 = arith.constant 0 : index
    %c0_11 = arith.constant 0 : index
    %15 = vector.load %arg5[%c0_10, %c0_11] : memref<1x32xf32, #tpu.memory_space<vmem>>, vector<1x32xf32>
    %16 = vector.broadcast %15 : vector<1x32xf32> to vector<16x32xf32>
    %17 = arith.addf %14, %16 : vector<16x32xf32>
    %cst_12 = arith.constant 0.000000e+00 : f32
    %18 = vector.broadcast %cst_12 : f32 to vector<16x32xf32>
    %19 = arith.cmpf oge, %17, %18 : vector<16x32xf32>
    %20 = vector.broadcast %1 : f32 to vector<16x32xf32>
    %21 = arith.mulf %20, %17 : vector<16x32xf32>
    %22 = arith.select %19, %17, %21 : vector<16x32xi1>, vector<16x32xf32>
    %c0_13 = arith.constant 0 : index
    %c0_14 = arith.constant 0 : index
    %23 = vector.load %arg6[%c0_13, %c0_14] : memref<32x64xf32, #tpu.memory_space<vmem>>, vector<32x64xf32>
    %cst_15 = arith.constant dense<0.000000e+00> : vector<16x64xf32>
    %24 = tpu.matmul %22, %23, %cst_15 {dimension_numbers = #tpu.dot_dimension_numbers<[1], [0], [0], [1], [0, 0, 1, 1], [], []>} : vector<16x32xf32>, vector<32x64xf32>, vector<16x64xf32> -> vector<16x64xf32>
    %c0_16 = arith.constant 0 : index
    %c0_17 = arith.constant 0 : index
    %25 = vector.load %arg7[%c0_16, %c0_17] : memref<1x64xf32, #tpu.memory_space<vmem>>, vector<1x64xf32>
    %26 = vector.broadcast %25 : vector<1x64xf32> to vector<16x64xf32>
    %27 = arith.addf %24, %26 : vector<16x64xf32>
    %c0_18 = arith.constant 0 : index
    %c0_19 = arith.constant 0 : index
    %28 = vector.load %arg9[%c0_18, %c0_19] : memref<16x64xf32, #tpu.memory_space<vmem>>, vector<16x64xf32>
    tpu.vector_store %arg9[%c0_18, %c0_19], %27 {strides = array<i32>} : memref<16x64xf32, #tpu.memory_space<vmem>>, vector<16x64xf32>,
    return
  }
  func.func @transform_0(%arg0: i32) -> (i32, i32) {
    %c0_i32 = arith.constant 0 : i32
    %c0_i32_0 = arith.constant 0 : i32
    return %arg0, %c0_i32 : i32, i32
  }
  func.func @transform_1(%arg0: i32) -> (i32, i32) {
    %c0_i32 = arith.constant 0 : i32
    %c0_i32_0 = arith.constant 0 : i32
    %c0_i32_1 = arith.constant 0 : i32
    return %c0_i32, %c0_i32_0 : i32, i32
  }
  func.func @transform_2(%arg0: i32) -> (i32, i32) {
    %c0_i32 = arith.constant 0 : i32
    %c0_i32_0 = arith.constant 0 : i32
    %c0_i32_1 = arith.constant 0 : i32
    return %c0_i32, %c0_i32_0 : i32, i32
  }
  func.func @transform_3(%arg0: i32) -> (i32, i32) {
    %c0_i32 = arith.constant 0 : i32
    %c0_i32_0 = arith.constant 0 : i32
    %c0_i32_1 = arith.constant 0 : i32
    return %c0_i32, %c0_i32_0 : i32, i32
  }
  func.func @transform_4(%arg0: i32) -> (i32, i32) {
    %c0_i32 = arith.constant 0 : i32
    %c0_i32_0 = arith.constant 0 : i32
    %c0_i32_1 = arith.constant 0 : i32
    return %c0_i32, %c0_i32_0 : i32, i32
  }
  func.func @transform_5(%arg0: i32) -> (i32, i32) {
    %c0_i32 = arith.constant 0 : i32
    %c0_i32_0 = arith.constant 0 : i32
    %c0_i32_1 = arith.constant 0 : i32
    return %c0_i32, %c0_i32_0 : i32, i32
  }
  func.func @transform_6(%arg0: i32) -> (i32, i32) {
    %c0_i32 = arith.constant 0 : i32
    %c0_i32_0 = arith.constant 0 : i32
    %c0_i32_1 = arith.constant 0 : i32
    return %c0_i32, %c0_i32_0 : i32, i32
  }
  func.func @transform_7(%arg0: i32) -> i32 {
    %c0_i32 = arith.constant 0 : i32
    %c0_i32_0 = arith.constant 0 : i32
    return %c0_i32 : i32
  }
  func.func @transform_8(%arg0: i32) -> (i32, i32) {
    %c0_i32 = arith.constant 0 : i32
    %c0_i32_0 = arith.constant 0 : i32
    return %arg0, %c0_i32 : i32, i32
  }
}

</mosaic_0001>

<bundles_post_ra>
// kernel: tpu_custom_call.1
= control target key start
LH: loop header
LB: loop body
LE: loop exit
PB: predicated region body
PF: predicated region fallthrough
CT: control target
= control target key end

     0   :  { %13 = vsyncpa [#allocation4], 0  ;;  %s628_s0 = inlined_call_operand.vmem [shape: f32[16,96], index: 0, kind: input, shape index: {}]   ;;  %s629_s1 = inlined_call_operand.vmem [shape: f32[96,32], index: 1, kind: input, shape index: {}]   ;;  %s630_s2 = inlined_call_operand.vmem [shape: f32[1,32], index: 2, kind: input, shape index: {}]   ;;  %s631_s3 = inlined_call_operand.vmem [shape: f32[32,32], index: 3, kind: input, shape index: {}]   ;;  %s632_s4 = inlined_call_operand.vmem [shape: f32[1,32], index: 4, kind: input, shape index: {}]   ;;  %s633_s5 = inlined_call_operand.vmem [shape: f32[32,64], index: 5, kind: input, shape index: {}]   ;;  %s634_s6 = inlined_call_operand.vmem [shape: f32[1,64], index: 6, kind: input, shape index: {}]   ;;  %s635_s7 = inlined_call_operand.vmem [shape: f32[2], index: 7, kind: input, shape index: {}]   ;;  %s636_s8 = inlined_call_operand.hbm [shape: f32[16,64], index: 8, kind: output, shape index: {}]  }
   0x1   :  { %14 = vsyncpa [#allocation3], 0  ;;  %s35_s29 = sshll.u32 %s635_s7, 4  ;;  %s36_s29 = int_to_ptr.vmem [resolvable:$true] %s35_s29 }
   0x2   :  { %s456_s30 = scalar_lea.vmem %s36_s29, 16  ;;  %p461_p1 = scmp.lt.s32.totalorder %s36_s29, %s36_s29 }
   0x3   :  { %p457_p0 = scmp.ne.s32.totalorder %s36_s29, %s456_s30  ;;  %p462_p2 = scmp.lt.s32.totalorder %s456_s30, %s456_s30 }
   0x5   :  { %p463_p3 = por %p462_p2, %p461_p1 }
   0x7   :  { %p464_p4 = pnand %p463_p3, %p457_p0 }
   0x9   :  { %467 = shalt.err (!%p464_p4)
}
   0xa   :  { %s492_s9 = smov [#allocation2]  }
   0xb   :  { %38 = dma.vmem_to_smem %s36_s29, 16, %s492_s9, [#allocation4]  }
   0xc   :  { %488 = dma.done.wait [#allocation4], 16  }
   0xd   :  { %489 = vsyncadd [#allocation4], 4294967280 }
   0xe   :  { %42 = sfence }
   0xf   :  { %v58_v0 = vld [vmem:[%s629_s1 + $0x58] sm:$0xff]  ;;  %v57_v1 = vld [vmem:[%s629_s1 + $0x50] sm:$0xff]  ;;  %v56_v2 = vld [vmem:[%s629_s1 + $0x48] sm:$0xff]  ;;  %vm66_vm0 = vcmask 785408   ;;  %s43_s20 = sld [smem:[#allocation2]]  ;;  %vm166_vm3 = vcmask 261120  }
  0x10   :  { %403 = vmatprep.subr.mxu0 %v58_v0  ;;  %v55_v3 = vld [vmem:[%s629_s1 + $0x40] sm:$0xff]  ;;  %v54_v5 = vld [vmem:[%s629_s1 + $0x38] sm:$0xff]  ;;  %v53_v6 = vld [vmem:[%s629_s1 + $0x30] sm:$0xff]  ;;  %s367_s29 = sld [smem:[#allocation2 + $0x1]]  ;;  %vm347_vm6 = vcmask 523264  }
  0x11   :  { %404 = vmatpush3.msra.mxu0 %v58_v0  ;;  %v45_v4 = vld [vmem:[%s628_s0] sm:$0xff]  ;;  %v52_v7 = vld [vmem:[%s629_s1 + $0x28] sm:$0xff]  ;;  %v50_v9 = vld [vmem:[%s629_s1 + $0x18] sm:$0xff] }
  0x12   :  { %405 = vmatprep.subr.mxu0 %v57_v1  ;;  %427 = vmatprep.mubr.msk.f32.mxu0 %vm66_vm0, %v45_v4  ;;  %v51_v8 = vld [vmem:[%s629_s1 + $0x20] sm:$0xff]  ;;  %v49_v10 = vld [vmem:[%s629_s1 + $0x10] sm:$0xff]  ;;  %v48_v11 = vld [vmem:[%s629_s1 + $0x8] sm:$0xff] }
  0x13   :  { %406 = vmatpush3.msra.mxu0 %v57_v1  ;;  %v47_v12 = vld [vmem:[%s629_s1] sm:$0xff]  ;;  %v46_v13 = vld [vmem:[%s628_s0 + $0x8] sm:$0xff]  ;;  %v158_v14 = vld [vmem:[%s631_s3 + $0x18] sm:$0xff] }
  0x14   :  { %407 = vmatprep.subr.mxu0 %v56_v2  ;;  %430 = vmatprep.subr.mxu1 %v158_v14  ;;  %v157_v15 = vld [vmem:[%s631_s3 + $0x10] sm:$0xff]  ;;  %v156_v16 = vld [vmem:[%s631_s3 + $0x8] sm:$0xff]  ;;  %v155_v17 = vld [vmem:[%s631_s3] sm:$0xff] }
  0x15   :  { %408 = vmatpush3.msra.mxu0 %v56_v2  ;;  %431 = vmatpush3.msra.mxu1 %v158_v14  ;;  %v368_v18 = vld [vmem:[%s630_s2] ss:$0 sm:$0xff]  ;;  %v150_v21 = vstv %s43_s20  ;;  %v258_v28 = vld [vmem:[%s633_s5 + $0x18] sm:$0xff]  ;;  %v257_v29 = vld [vmem:[%s633_s5 + $0x10] sm:$0xff] }
  0x16   :  { %409 = vmatprep.subr.mxu0 %v55_v3  ;;  %432 = vmatprep.subr.mxu1 %v157_v15  ;;  %v256_v30 = vld [vmem:[%s633_s5 + $0x8] sm:$0xff]  ;;  %v255_v31 = vld [vmem:[%s633_s5] sm:$0xff]  ;;  %v250_v35 = vstv %s367_s29 }
  0x17   :  { %410 = vmatpush3.msra.mxu0 %v55_v3  ;;  %433 = vmatpush3.msra.mxu1 %v157_v15  ;;  %v371_v32 = vld [vmem:[%s632_s4] ss:$0 sm:$0xff]  ;;  %s493_s4 = smov [#allocation5]  }
  0x18   :  { %411 = vmatprep.subr.mxu0 %v54_v5  ;;  %434 = vmatprep.subr.mxu1 %v156_v16  ;;  %v374_v42 = vld [vmem:[%s634_s6] ss:$0 sm:$0xff]  ;;  %s355_s11 = sshll.u32 %s493_s4, 4  ;;  %s356_s11 = int_to_ptr.vmem [resolvable:$true] %s355_s11 }
  0x19   :  { %412 = vmatpush3.msra.mxu0 %v54_v5  ;;  %435 = vmatpush3.msra.mxu1 %v156_v16  ;;  %s468_s12 = scalar_lea.vmem %s356_s11, 256  ;;  %p473_p6 = scmp.lt.s32.totalorder %s356_s11, %s356_s11 }
  0x1a   :  { %413 = vmatprep.subr.mxu0 %v53_v6  ;;  %436 = vmatprep.subr.mxu1 %v155_v17  ;;  %p469_p5 = scmp.ne.s32.totalorder %s356_s11, %s468_s12  ;;  %p474_p7 = scmp.lt.s32.totalorder %s468_s12, %s468_s12 }
  0x1b   :  { %414 = vmatpush3.msra.mxu0 %v53_v6  ;;  %437 = vmatpush3.msra.mxu1 %v155_v17 }
  0x1c   :  { %415 = vmatprep.subr.mxu0 %v52_v7  ;;  %441 = vmatprep.subr.mxu1 %v258_v28  ;;  %p475_p8 = por %p474_p7, %p473_p6 }
  0x1d   :  { %416 = vmatpush3.msra.mxu0 %v52_v7 }
  0x1e   :  { %417 = vmatprep.subr.mxu0 %v51_v8  ;;  %p476_p9 = pnand %p475_p8, %p469_p5 }
  0x1f   :  { %418 = vmatpush3.msra.mxu0 %v51_v8 }
  0x20   :  { %419 = vmatprep.subr.mxu0 %v50_v9 }
  0x21   :  { %420 = vmatpush3.msra.mxu0 %v50_v9 }
  0x22   :  { %421 = vmatprep.subr.mxu0 %v49_v10 }
  0x23   :  { %422 = vmatpush3.msra.mxu0 %v49_v10 }
  0x24   :  { %423 = vmatprep.subr.mxu0 %v48_v11 }
  0x25   :  { %424 = vmatpush3.msra.mxu0 %v48_v11 }
  0x26   :  { %425 = vmatprep.subr.mxu0 %v47_v12 }
  0x27   :  { %426 = vmatpush3.msra.mxu0 %v47_v12 }
  0x28   :  { %428 = vmatmul.mubr.msk.f32.vlgmr.msra.gmra.mxu0 %vm66_vm0, %v46_v13 }
  0xe8   :  { %v429_v19 = vpop.f32.mrf.mxu0 }
  0xe9   :  { %v145_v20 = vadd.f32 %v429_v19, %v368_v18 }
  0xea   :  { %v139_v22 = vpop.f32.mrf.mxu0 }
  0xeb   :  { %v140_v23 = vadd.f32 %v368_v18, %v139_v22  ;;  %v152_v24 = vmul.f32 %v150_v21, %v145_v20  ;;  %vm149_vm1 = vcmp.ge.f32.partialorder %v145_v20, 0.0 }
  0xed   :  { %vm148_vm2 = vcmp.ge.f32.partialorder %v140_v23, 0.0  ;;  %v151_v25 = vmul.f32 %v150_v21, %v140_v23  ;;  %v154_v27 = vsel %vm149_vm1, %v145_v20, %v152_v24 }
  0xef   :  { %v153_v26 = vsel %vm148_vm2, %v140_v23, %v151_v25 }
  0xf0   :  { %438 = vmatprep.mubr.msk.f32.mxu1 %vm166_vm3, %v153_v26 }
  0xf1   :  { %439 = vmatmul.mubr.msk.f32.vlgmr.msra.gmra.mxu1 %vm166_vm3, %v154_v27 }
  0xf2   :  { %442 = vmatpush3.msra.mxu1 %v258_v28 }
  0xf3   :  { %443 = vmatprep.subr.mxu1 %v257_v29 }
  0xf4   :  { %444 = vmatpush3.msra.mxu1 %v257_v29 }
  0xf5   :  { %445 = vmatprep.subr.mxu1 %v256_v30 }
  0xf6   :  { %446 = vmatpush3.msra.mxu1 %v256_v30 }
  0xf7   :  { %447 = vmatprep.subr.mxu1 %v255_v31 }
  0xf8   :  { %448 = vmatpush3.msra.mxu1 %v255_v31 }
 0x1b1   :  { %v440_v33 = vpop.f32.mrf.mxu1 }
 0x1b2   :  { %v245_v34 = vadd.f32 %v440_v33, %v371_v32 }
 0x1b3   :  { %v239_v36 = vpop.f32.mrf.mxu1 }
 0x1b4   :  { %v240_v37 = vadd.f32 %v371_v32, %v239_v36  ;;  %v252_v38 = vmul.f32 %v250_v35, %v245_v34  ;;  %vm249_vm4 = vcmp.ge.f32.partialorder %v245_v34, 0.0 }
 0x1b6   :  { %vm248_vm5 = vcmp.ge.f32.partialorder %v240_v37, 0.0  ;;  %v251_v39 = vmul.f32 %v250_v35, %v240_v37  ;;  %v254_v41 = vsel %vm249_vm4, %v245_v34, %v252_v38 }
 0x1b8   :  { %v253_v40 = vsel %vm248_vm5, %v240_v37, %v251_v39 }
 0x1b9   :  { %449 = vmatprep.mubr.msk.f32.mxu1 %vm166_vm3, %v253_v40 }
 0x1ba   :  { %450 = vmatmul.mubr.msk.f32.vlgmr.msra.gmra.mxu1 %vm166_vm3, %v254_v41 }
 0x27a   :  { %v451_v43 = vpop.f32.mrf.mxu1 }
 0x27b   :  { %v344_v44 = vadd.f32 %v451_v43, %v374_v42 }
 0x27c   :  { %v338_v45 = vpop.f32.mrf.mxu1 }
 0x27d   :  { %349 = vst.msk [vmem:[#allocation5 + $0x8] sm:$0xff] %vm347_vm6, %v344_v44  ;;  %v339_v46 = vadd.f32 %v374_v42, %v338_v45 }
 0x27f   :  { %348 = vst.msk [vmem:[#allocation5] sm:$0xff] %vm347_vm6, %v339_v46 }
 0x280   :  { %479 = shalt.err (!%p476_p9)
}
 0x281   :  { %s494_s13 = smov 128   ;;  %s495_s7 = smov 8  }
 0x282   :  { %361 = dma.vmem_to_hbm [thread:$0]  %s356_s11, 256, %s636_s8, [#allocation3], %s494_s13, %s494_s13, %s495_s7  }
 0x283   :  { %490 = dma.done.wait [#allocation3], 256  }
 0x284   :  { %491 = vsyncadd [#allocation3], 4294967040 }
 0x285   :  { %365 = vsyncpa [#allocation3], 1 }
 0x286   :  { %366 = vsyncpa [#allocation4], 1 }

</bundles_post_ra>
